<compile_context>
chip_gen: v5e
topology: v5e:2x2
jax: 0.10.0
libtpu: 0.0.40
codegen_flags: <defaults>
</compile_context>

<pallas_src>
import functools

import jax
import jax.numpy as jnp
from jax import lax
from jax.experimental import pallas as pl
from jax.experimental.pallas import tpu as pltpu


def _round_up(x: int, mult: int) -> int:
    return ((x + mult - 1) // mult) * mult


# ------------------------------ p == 2 kernel ------------------------------ #
def _pnorm2_kernel(x_ref, y_ref, xsq_ref, ysq_ref, o_ref):
    """o = sqrt(max(||x||^2 + ||y||^2 - 2 * sum_k x_k @ y_k^T, 0))."""
    k = pl.program_id(2)

    @pl.when(k == 0)
    def _():
        o_ref[...] = jnp.zeros_like(o_ref)

    # Pure MXU push in the hot loop: contract the shared d axis directly
    # (no transpose copy), accumulate f32 into the resident output block.
    o_ref[...] += lax.dot_general(
        x_ref[...], y_ref[...], (((1,), (1,)), ((), ())),
        preferred_element_type=jnp.float32)

    @pl.when(k == pl.num_programs(2) - 1)
    def _():
        # xsq is (bn, 1), ysq is (1, bm): broadcast-add, finish with sqrt.
        s = xsq_ref[...] + ysq_ref[...] - 2.0 * o_ref[...]
        # Cancellation can leave tiny negatives; clamp before sqrt.
        o_ref[...] = jnp.sqrt(jnp.maximum(s, 0.0))


# ---------------------------- general-p kernel ----------------------------- #
def _abs_pow(diff, p: float):
    """|diff|^p with VPU-friendly special cases (single EUP is precious)."""
    if p == 1.0:
        return diff
    if p == 0.5:
        return jnp.sqrt(diff)
    if p == 1.5:
        return diff * jnp.sqrt(diff)
    if float(p).is_integer() and 2.0 <= p <= 4.0:
        out = diff
        for _ in range(int(p) - 1):
            out = out * diff
        return out
    # Fractional p lowers to exp(p*log(.)) on the EUP; guard log(0) -> NaN.
    return jnp.where(diff > 0.0, diff ** p, 0.0)


def _pnorm_gen_kernel(x_ref, yt_ref, o_ref, *, p: float):
    """acc += sum_d |x[:, d] - y[d, :]|^p per feature; finalize ^(1/p)."""
    k = pl.program_id(2)

    @pl.when(k == 0)
    def _():
        o_ref[...] = jnp.zeros_like(o_ref)

    x = x_ref[...].astype(jnp.float32)      # (bn, bd)
    yt = yt_ref[...].astype(jnp.float32)    # (bd, bm), Y pre-transposed
    bd = x.shape[-1]

    # Static per-feature unroll (bd is a small, fixed tile of the d axis):
    # each step is a (bn, bm) sub / abs / pow / add on the VALU -- no
    # (bn, bm, bd) intermediate, no axis=-1 XLU reduce.
    acc = o_ref[...]
    for dd in range(bd):
        xd = x[:, dd:dd + 1]                # (bn, 1) static lane slice
        yd = yt[dd:dd + 1, :]               # (1, bm) static sublane slice
        diff = jnp.abs(xd - yd)             # (bn, bm)
        acc = acc + _abs_pow(diff, p)
    o_ref[...] = acc

    if p != 1.0:
        @pl.when(k == pl.num_programs(2) - 1)
        def _():
            a = o_ref[...]
            o_ref[...] = jnp.where(a > 0.0, a ** (1.0 / p), 0.0)


# --------------------------------- wrapper --------------------------------- #
def pnorm_distance(X: jax.Array, Y: jax.Array, p: float = 2.0, *,
                   block_n: int | None = None,
                   block_m: int | None = None,
                   block_d: int | None = None,
                   use_bf16_matmul: bool = True) -> jax.Array:
    """Pallas equivalent of torch.cdist(X, Y, p) for X (n, d), Y (m, d)."""
    n, d = X.shape
    m, d2 = Y.shape
    if d != d2:
        raise ValueError("feature dims must match")
    p = float(p)
    if not p > 0.0 or p == float("inf"):
        # TODO(synk): p == inf (Chebyshev) needs a max-reduce accumulator path.
        raise NotImplementedError("only finite p > 0 is supported")

    out_dtype = X.dtype if jnp.issubdtype(X.dtype, jnp.floating) else jnp.float32

    # ----- tile selection -----
    d128 = _round_up(d, 128)
    if p == 2.0:
        bn = block_n if block_n is not None else min(256, _round_up(n, 8))
        bm = block_m if block_m is not None else min(512, _round_up(m, 128))
        if block_d is not None:
            bd = _round_up(block_d, 128)
        elif d128 <= 512:
            bd = d128
        elif d128 % 512 == 0:
            bd = 512
        elif d128 % 256 == 0:
            bd = 256
        else:
            bd = 512                         # pad d up; zero pad is neutral
    else:
        # Per-feature path: bd bounds the in-kernel unroll depth.
        bn = block_n if block_n is not None else min(128, _round_up(n, 8))
        bm = block_m if block_m is not None else min(512, _round_up(m, 128))
        bd = _round_up(block_d, 128) if block_d is not None else 128
    bn = _round_up(bn, 8)                    # sublane granularity
    bm = _round_up(bm, 128)                  # lane-dense output (unmasked vst)

    d_pad = _round_up(d128, bd)
    n_pad = _round_up(n, bn)
    m_pad = _round_up(m, bm)

    # Megacore (v7x has 2 TensorCores): if both parallel axes collapsed to a
    # single block, split the lane axis so the second core gets work.
    if (block_m is None and n_pad // bn == 1 and m_pad // bm == 1
            and bm >= 256 and bm % 256 == 0):
        bm //= 2
        m_pad = _round_up(m, bm)

    # Zero-pad to tile multiples.
    Xp = X if (n_pad, d_pad) == (n, d) else jnp.pad(X, ((0, n_pad - n), (0, d_pad - d)))
    Yp = Y if (m_pad, d_pad) == (m, d) else jnp.pad(Y, ((0, m_pad - m), (0, d_pad - d)))

    grid = (n_pad // bn, m_pad // bm, d_pad // bd)
    compiler_params = pltpu.CompilerParams(
        dimension_semantics=("parallel", "parallel", "arbitrary"),
        vmem_limit_bytes=32 * 1024 * 1024,   # safe on v5e/v6e and v7x (64 MiB VMEM)
    )

    if p == 2.0:
        if use_bf16_matmul:
            # Native MXU dtype; halves the per-tile HBM->VMEM bytes and drops
            # in-kernel casts.  Norms are computed from the *same* rounded
            # values so the Gram identity stays consistent.
            Xp = Xp.astype(jnp.bfloat16)
            Yp = Yp.astype(jnp.bfloat16)
        # Hoisted squared norms (tiny wrapper-side compute, keeps the hot
        # loop a pure MXU push + f32 accumulate).
        xsq = jnp.sum(jnp.square(Xp.astype(jnp.float32)), axis=-1, keepdims=True)  # (n_pad, 1)
        ysq = jnp.sum(jnp.square(Yp.astype(jnp.float32)), axis=-1)[None, :]        # (1, m_pad)

        out = pl.pallas_call(
            _pnorm2_kernel,
            out_shape=jax.ShapeDtypeStruct((n_pad, m_pad), jnp.float32),
            grid_spec=pltpu.PrefetchScalarGridSpec(
                num_scalar_prefetch=0,
                grid=grid,
                in_specs=[
                    pl.BlockSpec((bn, bd), lambda i, j, k: (i, k)),   # X tile
                    pl.BlockSpec((bm, bd), lambda i, j, k: (j, k)),   # Y tile
                    pl.BlockSpec((bn, 1), lambda i, j, k: (i, 0)),    # ||x||^2 col
                    pl.BlockSpec((1, bm), lambda i, j, k: (0, j)),    # ||y||^2 row
                ],
                out_specs=pl.BlockSpec((bn, bm), lambda i, j, k: (i, j)),
            ),
            compiler_params=compiler_params,
        )(Xp, Yp, xsq, ysq)
    else:
        # Pre-transpose Y so per-feature rows are lane-dense in the kernel.
        Ytp = jnp.transpose(Yp)                                        # (d_pad, m_pad)
        kernel = functools.partial(_pnorm_gen_kernel, p=p)
        out = pl.pallas_call(
            kernel,
            out_shape=jax.ShapeDtypeStruct((n_pad, m_pad), jnp.float32),
            grid_spec=pltpu.PrefetchScalarGridSpec(
                num_scalar_prefetch=0,
                grid=grid,
                in_specs=[
                    pl.BlockSpec((bn, bd), lambda i, j, k: (i, k)),   # X tile
                    pl.BlockSpec((bd, bm), lambda i, j, k: (k, j)),   # Y^T tile
                ],
                out_specs=pl.BlockSpec((bn, bm), lambda i, j, k: (i, j)),
            ),
            compiler_params=compiler_params,
        )(Xp, Ytp)

    if (n_pad, m_pad) != (n, m):
        out = out[:n, :m]
    return out.astype(out_dtype)


def _pnorm_reference(X, Y, p=2.0):
    diff = jnp.abs(X[:, None, :].astype(jnp.float32) - Y[None, :, :].astype(jnp.float32))
    if p == 1.0:
        return jnp.sum(diff, axis=-1)
    if p == 2.0:
        return jnp.sqrt(jnp.sum(diff * diff, axis=-1))
    return jnp.sum(diff ** p, axis=-1) ** (1.0 / p)


if __name__ == "__main__":
    key = jax.random.PRNGKey(0)
    kx, ky = jax.random.split(key)

    # Deliberately not tile-aligned, to exercise the padding/slicing path.
    n, m, d = 48, 80, 96
    X = jax.random.normal(kx, (n, d), dtype=jnp.float32)
    Y = jax.random.normal(ky, (m, d), dtype=jnp.float32)

    # p = 2 (module default): MXU Gram path, bf16 matmul default.
    D2 = jax.block_until_ready(pnorm_distance(X, Y, p=2.0))
    D2_ref = _pnorm_reference(X, Y, 2.0)
    assert D2.shape == (n, m)
    assert jnp.allclose(D2, D2_ref, atol=2e-2, rtol=2e-2), "p=2 (bf16) mismatch vs reference"

    # p = 2, full-precision f32 fallback: tight tolerance.
    D2f = jax.block_until_ready(pnorm_distance(X, Y, p=2.0, use_bf16_matmul=False))
    assert jnp.allclose(D2f, D2_ref, atol=1e-4, rtol=1e-4), "p=2 (f32) mismatch vs reference"

    # p = 1: per-feature VALU accumulation path.
    D1 = jax.block_until_ready(pnorm_distance(X, Y, p=1.0))
    D1_ref = _pnorm_reference(X, Y, 1.0)
    assert D1.shape == (n, m)
    assert jnp.allclose(D1, D1_ref, atol=1e-4, rtol=1e-4), "p=1 mismatch vs reference"

    # p = 1.5: fractional p (sqrt decomposition + guarded root).
    D15 = jax.block_until_ready(pnorm_distance(X, Y, p=1.5))
    D15_ref = _pnorm_reference(X, Y, 1.5)
    assert jnp.allclose(D15, D15_ref, atol=1e-3, rtol=1e-3), "p=1.5 mismatch vs reference"

    print("KERNEL_OK")
</pallas_src>

<mosaic_0001>
module attributes {stable_mosaic.version = 11 : i64} {
  func.func @_pnorm2_kernel(%arg0: i32, %arg1: i32, %arg2: i32, %arg3: memref<48x128xbf16, #tpu.memory_space<vmem>>, %arg4: memref<128x128xbf16, #tpu.memory_space<vmem>>, %arg5: memref<48x1xf32, #tpu.memory_space<vmem>>, %arg6: memref<1x128xf32, #tpu.memory_space<vmem>>, %arg7: memref<48x128xf32, #tpu.memory_space<vmem>>) attributes {dimension_semantics = [#tpu.dimension_semantics<parallel>, #tpu.dimension_semantics<parallel>, #tpu.dimension_semantics<arbitrary>], iteration_bounds = array<i64: 1, 1, 1>, scalar_prefetch = 0 : i64, scratch_operands = 0 : i64, tpu.core_type = #tpu.core_type<tc>, window_params = [{transform_indices = @transform_0, window_bounds = array<i64: 48, 128>}, {transform_indices = @transform_1, window_bounds = array<i64: 128, 128>}, {transform_indices = @transform_2, window_bounds = array<i64: 48, 1>}, {transform_indices = @transform_3, window_bounds = array<i64: 1, 128>}, {transform_indices = @transform_4, window_bounds = array<i64: 48, 128>}]} {
    %c0_i32 = arith.constant 0 : i32
    %0 = arith.cmpi eq, %arg2, %c0_i32 : i32
    %1 = arith.extui %0 : i1 to i32
    %c0_i32_0 = arith.constant 0 : i32
    %2 = arith.cmpi ne, %1, %c0_i32_0 : i32
    scf.if %2 {
      %cst_10 = arith.constant 0.000000e+00 : f32
      %12 = vector.broadcast %cst_10 : f32 to vector<48x128xf32>
      %c0_11 = arith.constant 0 : index
      %c0_12 = arith.constant 0 : index
      %13 = vector.load %arg7[%c0_11, %c0_12] : memref<48x128xf32, #tpu.memory_space<vmem>>, vector<48x128xf32>
      tpu.vector_store %arg7[%c0_11, %c0_12], %12 {strides = array<i32>} : memref<48x128xf32, #tpu.memory_space<vmem>>, vector<48x128xf32>,
    } else {
    }
    %c0 = arith.constant 0 : index
    %c0_1 = arith.constant 0 : index
    %3 = vector.load %arg7[%c0, %c0_1] : memref<48x128xf32, #tpu.memory_space<vmem>>, vector<48x128xf32>
    %c0_2 = arith.constant 0 : index
    %c0_3 = arith.constant 0 : index
    %4 = vector.load %arg3[%c0_2, %c0_3] : memref<48x128xbf16, #tpu.memory_space<vmem>>, vector<48x128xbf16>
    %c0_4 = arith.constant 0 : index
    %c0_5 = arith.constant 0 : index
    %5 = vector.load %arg4[%c0_4, %c0_5] : memref<128x128xbf16, #tpu.memory_space<vmem>>, vector<128x128xbf16>
    %cst = arith.constant dense<0.000000e+00> : vector<48x128xf32>
    %6 = tpu.matmul %4, %5, %cst {dimension_numbers = #tpu.dot_dimension_numbers<[1], [1], [0], [0], [0, 0, 1, 0], [], []>} : vector<48x128xbf16>, vector<128x128xbf16>, vector<48x128xf32> -> vector<48x128xf32>
    %7 = arith.addf %3, %6 : vector<48x128xf32>
    %c0_6 = arith.constant 0 : index
    %c0_7 = arith.constant 0 : index
    %8 = vector.load %arg7[%c0_6, %c0_7] : memref<48x128xf32, #tpu.memory_space<vmem>>, vector<48x128xf32>
    tpu.vector_store %arg7[%c0_6, %c0_7], %7 {strides = array<i32>} : memref<48x128xf32, #tpu.memory_space<vmem>>, vector<48x128xf32>,
    %c0_i32_8 = arith.constant 0 : i32
    %9 = arith.cmpi eq, %arg2, %c0_i32_8 : i32
    %10 = arith.extui %9 : i1 to i32
    %c0_i32_9 = arith.constant 0 : i32
    %11 = arith.cmpi ne, %10, %c0_i32_9 : i32
    scf.if %11 {
      %c0_10 = arith.constant 0 : index
      %c0_11 = arith.constant 0 : index
      %12 = vector.load %arg5[%c0_10, %c0_11] : memref<48x1xf32, #tpu.memory_space<vmem>>, vector<48x1xf32>
      %c0_12 = arith.constant 0 : index
      %c0_13 = arith.constant 0 : index
      %13 = vector.load %arg6[%c0_12, %c0_13] : memref<1x128xf32, #tpu.memory_space<vmem>>, vector<1x128xf32>
      %14 = vector.broadcast %12 : vector<48x1xf32> to vector<48x128xf32>
      %15 = vector.broadcast %13 : vector<1x128xf32> to vector<48x128xf32>
      %16 = arith.addf %14, %15 : vector<48x128xf32>
      %c0_14 = arith.constant 0 : index
      %c0_15 = arith.constant 0 : index
      %17 = vector.load %arg7[%c0_14, %c0_15] : memref<48x128xf32, #tpu.memory_space<vmem>>, vector<48x128xf32>
      %cst_16 = arith.constant 2.000000e+00 : f32
      %18 = vector.broadcast %cst_16 : f32 to vector<48x128xf32>
      %19 = arith.mulf %18, %17 : vector<48x128xf32>
      %20 = arith.subf %16, %19 : vector<48x128xf32>
      %cst_17 = arith.constant 0.000000e+00 : f32
      %21 = vector.broadcast %cst_17 : f32 to vector<48x128xf32>
      %22 = arith.maximumf %20, %21 : vector<48x128xf32>
      %23 = math.sqrt %22 : vector<48x128xf32>
      %c0_18 = arith.constant 0 : index
      %c0_19 = arith.constant 0 : index
      %24 = vector.load %arg7[%c0_18, %c0_19] : memref<48x128xf32, #tpu.memory_space<vmem>>, vector<48x128xf32>
      tpu.vector_store %arg7[%c0_18, %c0_19], %23 {strides = array<i32>} : memref<48x128xf32, #tpu.memory_space<vmem>>, vector<48x128xf32>,
    } else {
    }
    return
  }
  func.func @transform_0(%arg0: i32, %arg1: i32, %arg2: i32) -> (i32, i32) {
    %c0_i32 = arith.constant 0 : i32
    return %arg0, %arg2 : i32, i32
  }
  func.func @transform_1(%arg0: i32, %arg1: i32, %arg2: i32) -> (i32, i32) {
    %c0_i32 = arith.constant 0 : i32
    return %arg1, %arg2 : i32, i32
  }
  func.func @transform_2(%arg0: i32, %arg1: i32, %arg2: i32) -> (i32, i32) {
    %c0_i32 = arith.constant 0 : i32
    %c0_i32_0 = arith.constant 0 : i32
    return %arg0, %c0_i32 : i32, i32
  }
  func.func @transform_3(%arg0: i32, %arg1: i32, %arg2: i32) -> (i32, i32) {
    %c0_i32 = arith.constant 0 : i32
    %c0_i32_0 = arith.constant 0 : i32
    return %c0_i32, %arg1 : i32, i32
  }
  func.func @transform_4(%arg0: i32, %arg1: i32, %arg2: i32) -> (i32, i32) {
    %c0_i32 = arith.constant 0 : i32
    return %arg0, %arg1 : i32, i32
  }
}

</mosaic_0001>

<bundles_post_ra>
// kernel: tpu_custom_call.1
= control target key start
LH: loop header
LB: loop body
LE: loop exit
PB: predicated region body
PF: predicated region fallthrough
CT: control target
= control target key end

     0   :  { %9 = vsyncpa [#allocation3], 0  ;;  %s613_s0 = inlined_call_operand.vmem [shape: bf16[48,128], index: 0, kind: input, shape index: {}]   ;;  %s614_s1 = inlined_call_operand.hbm [shape: bf16[128,128], index: 1, kind: input, shape index: {}]   ;;  %s615_s2 = inlined_call_operand.vmem [shape: f32[48,1], index: 2, kind: input, shape index: {}]   ;;  %s616_s3 = inlined_call_operand.vmem [shape: f32[1,128], index: 3, kind: input, shape index: {}]   ;;  %s617_s4 = inlined_call_operand.hbm [shape: f32[48,128], index: 4, kind: output, shape index: {}]  }
   0x1   :  { %10 = vsyncpa [#allocation4], 0  ;;  %s17_s17 = sshll.u32 %s614_s1, 4  ;;  %s491_s18 = smov [#allocation2]   ;;  %s18_s17 = int_to_ptr.hbm [resolvable:$true] %s17_s17 }
   0x2   :  { %s19_s19 = sshll.u32 %s491_s18, 4  ;;  %s492_s20 = smov 64   ;;  %s20_s19 = int_to_ptr.vmem [resolvable:$true] %s19_s19 }
   0x3   :  { %s493_s21 = smov 4  }
   0x4   :  { %25 = dma.hbm_to_vmem [thread:$0]  %s18_s17, 1024, %s20_s19, [#allocation3], %s492_s20, %s492_s20, %s493_s21  }
   0x5   :  { %487 = dma.done.wait [#allocation3], 1024  }
   0x6   :  { %488 = vsyncadd [#allocation3], 4294966272  ;;  %v398_v0 = vld [vmem:[#allocation2 + $0x38] sm:$0xff]  ;;  %v397_v1 = vld [vmem:[#allocation2 + $0x30] sm:$0xff]  ;;  %v494_v7 = vmov 0   ;;  %s331_s16 = sshll.u32 %s617_s4, 4  ;;  %s332_s16 = int_to_ptr.hbm [resolvable:$true] %s331_s16 }
   0x7   :  { %138 = vmatpush.bf16.xpose.msra.mxu0 %v398_v0  ;;  %399 = vmatpush.bf16.xpose.msra.mxu1 %v398_v0  ;;  %v396_v2 = vld [vmem:[#allocation2 + $0x28] sm:$0xff]  ;;  %v395_v3 = vld [vmem:[#allocation2 + $0x20] sm:$0xff]  ;;  %v394_v4 = vld [vmem:[#allocation2 + $0x18] sm:$0xff]  ;;  %s496_s17 = smov 128   ;;  %s497_s18 = smov 8  }
   0x8   :  { %400 = vmatpush.bf16.xpose.msra.mxu2 %v398_v0  ;;  %v179_v5 = vld [vmem:[%s615_s2 + $0x10] sm:$0xff]  ;;  %v177_v6 = vld [vmem:[%s615_s2] sm:$0xff]  ;;  %424 = vset.pattern.permute.xlu1 %v494_v7  ;;  %v180_v10 = vld [vmem:[%s615_s2 + $0x18] sm:$0xff] }
   0x9   :  { %v181_v8 = vld [vmem:[%s615_s2 + $0x20] sm:$0xff]  ;;  %423 = vset.pattern.permute.xlu0 %v494_v7  ;;  %196 = vperm.xlu1 %424, %v179_v5   ;;  %v393_v9 = vld [vmem:[#allocation2 + $0x10] sm:$0xff]  ;;  %v178_v11 = vld [vmem:[%s615_s2 + $0x8] sm:$0xff] }
   0xa   :  { %186 = vperm.xlu0 %423, %v177_v6   ;;  %425 = vset.pattern.permute.xlu2 %v494_v7  ;;  %v182_v12 = vld [vmem:[%s615_s2 + $0x28] sm:$0xff]  ;;  %v391_v14 = vld [vmem:[#allocation2] sm:$0xff]  ;;  %v390_v17 = vld [vmem:[%s613_s0 + $0x10] sm:$0xff] }
   0xb   :  { %206 = vperm.xlu2 %425, %v181_v8   ;;  %v392_v13 = vld [vmem:[#allocation2 + $0x8] sm:$0xff]  ;;  %v388_v15 = vld [vmem:[%s613_s0] sm:$0xff] }
   0xc   :  { %v389_v16 = vld [vmem:[%s613_s0 + $0x8] sm:$0xff]  ;;  %v426_v18 = vld [vmem:[%s616_s3] ss:$0 sm:$0xff]  ;;  %s495_s0 = smov [#allocation5]  }
   0xd   :  { %s329_s3 = sshll.u32 %s495_s0, 4  ;;  %s330_s3 = int_to_ptr.vmem [resolvable:$true] %s329_s3 }
   0xf   :  { %139 = vmatpush.bf16.xpose.msra.mxu0 %v397_v1  ;;  %401 = vmatpush.bf16.xpose.msra.mxu1 %v397_v1 }
  0x10   :  { %402 = vmatpush.bf16.xpose.msra.mxu2 %v397_v1 }
  0x11   :  { %201 = vperm.xlu1 %424, %v180_v10  }
  0x12   :  { %191 = vperm.xlu0 %423, %v178_v11  }
  0x13   :  { %211 = vperm.xlu2 %425, %v182_v12  }
  0x17   :  { %140 = vmatpush.bf16.xpose.msra.mxu0 %v396_v2  ;;  %403 = vmatpush.bf16.xpose.msra.mxu1 %v396_v2 }
  0x18   :  { %404 = vmatpush.bf16.xpose.msra.mxu2 %v396_v2 }
  0x1f   :  { %141 = vmatpush.bf16.xpose.msra.mxu0 %v395_v3  ;;  %405 = vmatpush.bf16.xpose.msra.mxu1 %v395_v3 }
  0x20   :  { %406 = vmatpush.bf16.xpose.msra.mxu2 %v395_v3 }
  0x27   :  { %142 = vmatpush.bf16.xpose.msra.mxu0 %v394_v4  ;;  %407 = vmatpush.bf16.xpose.msra.mxu1 %v394_v4 }
  0x28   :  { %408 = vmatpush.bf16.xpose.msra.mxu2 %v394_v4 }
  0x2f   :  { %143 = vmatpush.bf16.xpose.msra.mxu0 %v393_v9  ;;  %409 = vmatpush.bf16.xpose.msra.mxu1 %v393_v9 }
  0x30   :  { %410 = vmatpush.bf16.xpose.msra.mxu2 %v393_v9 }
  0x37   :  { %144 = vmatpush.bf16.xpose.msra.mxu0 %v392_v13  ;;  %411 = vmatpush.bf16.xpose.msra.mxu1 %v392_v13 }
  0x38   :  { %412 = vmatpush.bf16.xpose.msra.mxu2 %v392_v13 }
  0x3f   :  { %145 = vmatpush.bf16.xpose.msra.mxu0 %v391_v14  ;;  %413 = vmatpush.bf16.xpose.msra.mxu1 %v391_v14 }
  0x40   :  { %414 = vmatpush.bf16.xpose.msra.mxu2 %v391_v14 }
  0x46   :  { %146 = vmatmul.bf16.vlgmr.msra.gmra.mxu0 %v388_v15  ;;  %151 = vmatmul.bf16.vlgmr.msra.gmra.mxu1 %v389_v16 }
  0x47   :  { %156 = vmatmul.bf16.vlgmr.msra.gmra.mxu2 %v390_v17 }
  0x65   :  { %v207_v27 = vpop.permute.xlu2 %206 }
  0x66   :  { %v221_v33 = vadd.f32 %v426_v18, %v207_v27 }
  0x6d   :  { %v212_v47 = vpop.permute.xlu2 %211 }
  0x6e   :  { %v222_v54 = vadd.f32 %v426_v18, %v212_v47 }
  0x7b   :  { %v197_v19 = vpop.permute.xlu1 %196 }
  0x7c   :  { %v187_v20 = vpop.permute.xlu0 %186  ;;  %v219_v23 = vadd.f32 %v426_v18, %v197_v19 }
  0x7d   :  { %v217_v24 = vadd.f32 %v426_v18, %v187_v20 }
  0x83   :  { %v202_v37 = vpop.permute.xlu1 %201 }
  0x84   :  { %v192_v38 = vpop.permute.xlu0 %191  ;;  %v220_v40 = vadd.f32 %v426_v18, %v202_v37 }
  0x85   :  { %v218_v42 = vadd.f32 %v426_v18, %v192_v38 }
  0xc3   :  { %v147_v21 = vpop.f32.mrf.mxu0  ;;  %v152_v22 = vpop.f32.mrf.mxu1 }
  0xc4   :  { %v231_v25 = vmul.f32 2.0, %v152_v22  ;;  %v229_v26 = vmul.f32 2.0, %v147_v21 }
  0xc6   :  { %v237_v28 = vsub.f32 %v219_v23, %v231_v25  ;;  %v235_v29 = vsub.f32 %v217_v24, %v229_v26 }
  0xc8   :  { %v556_v31 = vmax.f32 %v237_v28, 0.0  ;;  %v558_v32 = vmax.f32 %v235_v29, 0.0 }
  0xca   :  { %v157_v30 = vpop.f32.mrf.mxu2  ;;  %427 = vrsqrt.f32 %v556_v31  ;;  %vm278_vm0 = vcmp.eq.f32.partialorder %v556_v31, inf  ;;  %vm280_vm1 = vcmp.eq.f32.partialorder %v556_v31, 0.0  ;;  %v281_v8 = vand.u32 2147483648, %v556_v31 }
  0xcb   :  { %v149_v34 = vpop.f32.mrf.mxu0  ;;  %v154_v35 = vpop.f32.mrf.mxu1  ;;  %v233_v36 = vmul.f32 2.0, %v157_v30  ;;  %429 = vrsqrt.f32 %v558_v32  ;;  %vm254_vm2 = vcmp.eq.f32.partialorder %v558_v32, inf  ;;  %vm256_vm3 = vcmp.eq.f32.partialorder %v558_v32, 0.0 }
  0xcc   :  { %v232_v41 = vmul.f32 2.0, %v154_v35  ;;  %v230_v43 = vmul.f32 2.0, %v149_v34  ;;  %v257_v14 = vand.u32 2147483648, %v558_v32 }
  0xcd   :  { %v239_v39 = vsub.f32 %v221_v33, %v233_v36 }
  0xce   :  { %v238_v48 = vsub.f32 %v220_v40, %v232_v41  ;;  %v236_v49 = vsub.f32 %v218_v42, %v230_v43 }
  0xcf   :  { %v562_v44 = vmax.f32 %v239_v39, 0.0 }
  0xd0   :  { %v428_v45 = vpop.eup %427  ;;  %v567_v53 = vmax.f32 %v238_v48, 0.0  ;;  %v569_v55 = vmax.f32 %v236_v49, 0.0 }
  0xd1   :  { %v430_v50 = vpop.eup %429  ;;  %431 = vrsqrt.f32 %v562_v44  ;;  %v272_v51 = vmul.f32 %v428_v45, %v556_v31  ;;  %vm302_vm4 = vcmp.eq.f32.partialorder %v562_v44, inf  ;;  %v305_v30 = vand.u32 2147483648, %v562_v44 }
  0xd2   :  { %v159_v46 = vpop.f32.mrf.mxu2  ;;  %v248_v52 = vmul.f32 %v430_v50, %v558_v32  ;;  %433 = vrsqrt.f32 %v567_v53  ;;  %vm304_vm5 = vcmp.eq.f32.partialorder %v562_v44, 0.0  ;;  %vm290_vm6 = vcmp.eq.f32.partialorder %v567_v53, inf }
  0xd3   :  { %v273_v56 = vmul.f32 %v428_v45, %v272_v51  ;;  %v234_v58 = vmul.f32 2.0, %v159_v46  ;;  %435 = vrsqrt.f32 %v569_v55  ;;  %vm292_vm7 = vcmp.eq.f32.partialorder %v567_v53, 0.0 }
  0xd4   :  { %v249_v57 = vmul.f32 %v430_v50, %v248_v52  ;;  %v293_v38 = vand.u32 2147483648, %v567_v53  ;;  %vm266_vm8 = vcmp.eq.f32.partialorder %v569_v55, inf  ;;  %v269_v42 = vand.u32 2147483648, %v569_v55 }
  0xd5   :  { %v274_v59 = vmul.f32 0.5, %v273_v56  ;;  %v240_v61 = vsub.f32 %v222_v54, %v234_v58  ;;  %vm268_vm9 = vcmp.eq.f32.partialorder %v569_v55, 0.0 }
  0xd6   :  { %v250_v60 = vmul.f32 0.5, %v249_v57 }
  0xd7   :  { %v432_v62 = vpop.eup %431  ;;  %v275_v0 = vsub.f32 1.5, %v274_v59  ;;  %v574_v2 = vmax.f32 %v240_v61, 0.0 }
  0xd8   :  { %v296_v63 = vmul.f32 %v432_v62, %v562_v44  ;;  %v251_v1 = vsub.f32 1.5, %v250_v60  ;;  %v434_v3 = vpop.eup %433 }
  0xd9   :  { %v276_v5 = vmul.f32 %v428_v45, %v275_v0  ;;  %437 = vrsqrt.f32 %v574_v2  ;;  %v436_v7 = vpop.eup %435  ;;  %v284_v9 = vmul.f32 %v434_v3, %v567_v53  ;;  %vm314_vm10 = vcmp.eq.f32.partialorder %v574_v2, inf }
  0xda   :  { %v297_v4 = vmul.f32 %v432_v62, %v296_v63  ;;  %v252_v6 = vmul.f32 %v430_v50, %v251_v1  ;;  %v260_v13 = vmul.f32 %v436_v7, %v569_v55  ;;  %v317_v48 = vand.u32 2147483648, %v574_v2 }
  0xdb   :  { %v277_v11 = vmul.f32 %v276_v5, %v556_v31  ;;  %v285_v15 = vmul.f32 %v434_v3, %v284_v9  ;;  %vm316_vm11 = vcmp.eq.f32.partialorder %v574_v2, 0.0 }
  0xdc   :  { %v298_v10 = vmul.f32 0.5, %v297_v4  ;;  %v253_v12 = vmul.f32 %v252_v6, %v558_v32  ;;  %v261_v19 = vmul.f32 %v436_v7, %v260_v13 }
  0xdd   :  { %v279_v17 = vsel %vm278_vm0, %v556_v31, %v277_v11  ;;  %v286_v22 = vmul.f32 0.5, %v285_v15 }
  0xde   :  { %v299_v16 = vsub.f32 1.5, %v298_v10  ;;  %v255_v18 = vsel %vm254_vm2, %v558_v32, %v253_v12  ;;  %v282_v20 = vsel %vm280_vm1, %v281_v8, %v279_v17  ;;  %v262_v25 = vmul.f32 0.5, %v261_v19 }
  0xdf   :  { %v258_v21 = vsel %vm256_vm3, %v257_v14, %v255_v18  ;;  %v438_v23 = vpop.eup %437  ;;  %321 = vst [vmem:[#allocation5 + $0x10] sm:$0xff] %v282_v20  ;;  %v287_v27 = vsub.f32 1.5, %v286_v22 }
  0xe0   :  { %v300_v24 = vmul.f32 %v432_v62, %v299_v16  ;;  %319 = vst [vmem:[#allocation5] sm:$0xff] %v258_v21  ;;  %v308_v26 = vmul.f32 %v438_v23, %v574_v2  ;;  %v263_v29 = vsub.f32 1.5, %v262_v25 }
  0xe1   :  { %v288_v32 = vmul.f32 %v434_v3, %v287_v27 }
  0xe2   :  { %v301_v28 = vmul.f32 %v300_v24, %v562_v44  ;;  %v309_v31 = vmul.f32 %v438_v23, %v308_v26  ;;  %v264_v34 = vmul.f32 %v436_v7, %v263_v29 }
  0xe3   :  { %v289_v37 = vmul.f32 %v288_v32, %v567_v53 }
  0xe4   :  { %v303_v33 = vsel %vm302_vm4, %v562_v44, %v301_v28  ;;  %v310_v36 = vmul.f32 0.5, %v309_v31  ;;  %v265_v39 = vmul.f32 %v264_v34, %v569_v55 }
  0xe5   :  { %v306_v35 = vsel %vm304_vm5, %v305_v30, %v303_v33  ;;  %v291_v41 = vsel %vm290_vm6, %v567_v53, %v289_v37 }
  0xe6   :  { %323 = vst [vmem:[#allocation5 + $0x20] sm:$0xff] %v306_v35  ;;  %v311_v40 = vsub.f32 1.5, %v310_v36  ;;  %v294_v43 = vsel %vm292_vm7, %v293_v38, %v291_v41  ;;  %v267_v44 = vsel %vm266_vm8, %v569_v55, %v265_v39 }
  0xe7   :  { %322 = vst [vmem:[#allocation5 + $0x18] sm:$0xff] %v294_v43  ;;  %v270_v46 = vsel %vm268_vm9, %v269_v42, %v267_v44 }
  0xe8   :  { %v312_v45 = vmul.f32 %v438_v23, %v311_v40  ;;  %320 = vst [vmem:[#allocation5 + $0x8] sm:$0xff] %v270_v46 }
  0xea   :  { %v313_v47 = vmul.f32 %v312_v45, %v574_v2 }
  0xec   :  { %v315_v49 = vsel %vm314_vm10, %v574_v2, %v313_v47 }
  0xed   :  { %v318_v50 = vsel %vm316_vm11, %v317_v48, %v315_v49 }
  0xee   :  { %324 = vst [vmem:[#allocation5 + $0x28] sm:$0xff] %v318_v50 }
  0xef   :  { %337 = dma.vmem_to_hbm [thread:$0]  %s330_s3, 768, %s332_s16, [#allocation4], %s496_s17, %s496_s17, %s497_s18  }
  0xf0   :  { %489 = dma.done.wait [#allocation4], 768  }
  0xf1   :  { %490 = vsyncadd [#allocation4], 4294966528 }
  0xf2   :  { %342 = vsyncpa [#allocation3], 1 }
  0xf3   :  { %343 = vsyncpa [#allocation4], 1 }

</bundles_post_ra>
